<compile_context>
chip_gen: v5e
topology: v5e:2x2
jax: 0.10.0
libtpu: 0.0.40
codegen_flags: <defaults>
</compile_context>

<pallas_src>
import functools

import jax
import jax.numpy as jnp
from jax.experimental import pallas as pl
from jax.experimental.pallas import tpu as pltpu


def _sigmoid(z, approx):
    # exp on the EUP; reciprocal either exact (VPU divide) or approximate
    # (EUP vrcp, free slot) depending on the static `approx` flag.
    denom = 1.0 + jnp.exp(-z)
    if approx:
        return pl.reciprocal(denom, approx=True)
    return 1.0 / denom


def _mlp_sigmoid_kernel(x_ref, w1b_ref, w2_ref, b2_ref, o_ref, *, input_dim, approx):
    """One batch tile of the two-layer sigmoid MLP.

    x_ref   : (TB, D)   f32  VMEM
    w1b_ref : (D+1, H)  f32  VMEM   rows 0..D-1 = W1^T, row D = b1
    w2_ref  : (1, H)    f32  VMEM   lane-dense second-layer weight row
    b2_ref  : (1,)      f32  SMEM   scalar output bias
    o_ref   : (TB, 1)   f32  VMEM
    """
    x = x_ref[...]                                        # (TB, D)
    w1 = w1b_ref[0:input_dim, :]                          # (D, H)  static slice
    b1 = w1b_ref[input_dim:input_dim + 1, :]              # (1, H), broadcasts over rows

    # Layer 1: MXU matmul with f32 accumulation + VPU bias add + sigmoid.
    z1 = jnp.dot(x, w1, preferred_element_type=jnp.float32) + b1
    h = _sigmoid(z1, approx)                              # (TB, H)

    # Layer 2: N=1 output -> skip the MXU. VPU multiply against the lane-dense
    # (1, H) weight row, XLU lane reduce, scalar bias add from SMEM.
    w2 = w2_ref[...]                                      # (1, H)
    z2 = jnp.sum(h * w2, axis=-1, keepdims=True) + b2_ref[0]   # (TB, 1)
    o_ref[...] = _sigmoid(z2, approx)


def logistic_regression_forward(x, hidden_w, hidden_b, output_w, output_b,
                                *, block_b=1024, approx_sigmoid=False):
    """Forward pass matching the PyTorch module.

    x        : (B, D)  f32
    hidden_w : (H, D)  f32   (nn.Linear(input_dim, H).weight)
    hidden_b : (H,)    f32
    output_w : (1, H)  f32   (nn.Linear(H, 1).weight)
    output_b : (1,)    f32
    returns  : (B, 1)  f32
    """
    B, D = x.shape
    H = hidden_w.shape[0]

    # Pack parameters (in a real model these would be pre-packed once):
    #   w1b = [W1^T ; b1]  -> one VMEM slab, one DMA instead of two.
    w1b = jnp.concatenate(
        [hidden_w.T.astype(jnp.float32),
         hidden_b.reshape(1, H).astype(jnp.float32)], axis=0)          # (D+1, H)
    w2r = output_w.reshape(1, H).astype(jnp.float32)                   # (1, H)
    b2s = output_b.reshape(1).astype(jnp.float32)                      # (1,) -> SMEM

    # Batch tile: either the full batch (always a legal full-extent block) or
    # 1024 rows (multiple of 8, the mem-bound sweet spot).
    tb = B if B <= block_b else block_b
    grid = (pl.cdiv(B, tb),)

    kernel = functools.partial(_mlp_sigmoid_kernel,
                               input_dim=D, approx=approx_sigmoid)

    return pl.pallas_call(
        kernel,
        out_shape=jax.ShapeDtypeStruct((B, 1), jnp.float32),
        grid=grid,
        in_specs=[
            pl.BlockSpec((tb, D), lambda i: (i, 0),
                         memory_space=pltpu.MemorySpace.VMEM),
            # Constant index_map -> params fetched once, resident across tiles.
            pl.BlockSpec((D + 1, H), lambda i: (0, 0),
                         memory_space=pltpu.MemorySpace.VMEM),
            pl.BlockSpec((1, H), lambda i: (0, 0),
                         memory_space=pltpu.MemorySpace.VMEM),
            pl.BlockSpec(memory_space=pltpu.MemorySpace.SMEM),
        ],
        out_specs=pl.BlockSpec((tb, 1), lambda i: (i, 0),
                               memory_space=pltpu.MemorySpace.VMEM),
        compiler_params=pltpu.CompilerParams(
            # Batch tiles are independent -> shard across v7x's 2 TensorCores.
            dimension_semantics=("parallel",),
        ),
    )(x, w1b, w2r, b2s)


def _reference_forward(x, hidden_w, hidden_b, output_w, output_b):
    z1 = jnp.dot(x, hidden_w.T, precision=jax.lax.Precision.HIGHEST) \
        + hidden_b[None, :]
    h = 1.0 / (1.0 + jnp.exp(-z1))
    z2 = jnp.sum(h * output_w.reshape(1, -1), axis=-1, keepdims=True) \
        + output_b.reshape(1, 1)
    return 1.0 / (1.0 + jnp.exp(-z2))


if __name__ == "__main__":
    # Small shapes consistent with the module: batch=8, input_dim=16, hidden=32.
    B, D, H = 8, 16, 32
    key = jax.random.PRNGKey(0)
    kx, k1, k2, k3, k4 = jax.random.split(key, 5)

    x = jax.random.normal(kx, (B, D), dtype=jnp.float32)

    # Deterministic init mimicking nn.Linear's uniform(-1/sqrt(fan_in), ...).
    bound1 = 1.0 / jnp.sqrt(jnp.float32(D))
    bound2 = 1.0 / jnp.sqrt(jnp.float32(H))
    hidden_w = jax.random.uniform(k1, (H, D), jnp.float32, -bound1, bound1)
    hidden_b = jax.random.uniform(k2, (H,), jnp.float32, -bound1, bound1)
    output_w = jax.random.uniform(k3, (1, H), jnp.float32, -bound2, bound2)
    output_b = jax.random.uniform(k4, (1,), jnp.float32, -bound2, bound2)

    out = logistic_regression_forward(x, hidden_w, hidden_b, output_w, output_b)
    out = jax.block_until_ready(out)

    ref = _reference_forward(x, hidden_w, hidden_b, output_w, output_b)
    assert out.shape == (B, 1)
    assert jnp.allclose(out, ref, atol=1e-5, rtol=1e-5), \
        float(jnp.max(jnp.abs(out - ref)))

    print("KERNEL_OK")
</pallas_src>

<mosaic_0001>
module attributes {stable_mosaic.version = 11 : i64} {
  func.func @_mlp_sigmoid_kernel(%arg0: i32, %arg1: memref<8x16xf32, #tpu.memory_space<vmem>>, %arg2: memref<17x32xf32, #tpu.memory_space<vmem>>, %arg3: memref<1x32xf32, #tpu.memory_space<vmem>>, %arg4: memref<1xf32, #tpu.memory_space<smem>>, %arg5: memref<8x1xf32, #tpu.memory_space<vmem>>) attributes {dimension_semantics = [#tpu.dimension_semantics<parallel>], iteration_bounds = array<i64: 1>, scalar_prefetch = 0 : i64, scratch_operands = 0 : i64, tpu.core_type = #tpu.core_type<tc>, window_params = [{transform_indices = @transform_0, window_bounds = array<i64: 8, 16>}, {pipeline_mode = #tpu.pipeline_mode<synchronous>, transform_indices = @transform_1, window_bounds = array<i64: 17, 32>}, {pipeline_mode = #tpu.pipeline_mode<synchronous>, transform_indices = @transform_2, window_bounds = array<i64: 1, 32>}, {transform_indices = @transform_3, window_bounds = array<i64: 1>}, {transform_indices = @transform_4, window_bounds = array<i64: 8, 1>}]} {
    %c0 = arith.constant 0 : index
    %c0_0 = arith.constant 0 : index
    %0 = vector.load %arg1[%c0, %c0_0] : memref<8x16xf32, #tpu.memory_space<vmem>>, vector<8x16xf32>
    %c0_1 = arith.constant 0 : index
    %c0_2 = arith.constant 0 : index
    %1 = vector.load %arg2[%c0_1, %c0_2] : memref<17x32xf32, #tpu.memory_space<vmem>>, vector<16x32xf32>
    %c16 = arith.constant 16 : index
    %c0_3 = arith.constant 0 : index
    %2 = vector.load %arg2[%c16, %c0_3] : memref<17x32xf32, #tpu.memory_space<vmem>>, vector<1x32xf32>
    %cst = arith.constant dense<0.000000e+00> : vector<8x32xf32>
    %3 = tpu.matmul %0, %1, %cst {dimension_numbers = #tpu.dot_dimension_numbers<[1], [0], [0], [1], [0, 0, 1, 1], [], []>} : vector<8x16xf32>, vector<16x32xf32>, vector<8x32xf32> -> vector<8x32xf32>
    %4 = vector.broadcast %2 : vector<1x32xf32> to vector<8x32xf32>
    %5 = arith.addf %3, %4 : vector<8x32xf32>
    %cst_4 = arith.constant 0.000000e+00 : f32
    %6 = vector.broadcast %cst_4 : f32 to vector<8x32xf32>
    %7 = arith.subf %6, %5 : vector<8x32xf32>
    %8 = math.exp %7 : vector<8x32xf32>
    %cst_5 = arith.constant 1.000000e+00 : f32
    %9 = vector.broadcast %cst_5 : f32 to vector<8x32xf32>
    %10 = arith.addf %9, %8 : vector<8x32xf32>
    %cst_6 = arith.constant 1.000000e+00 : f32
    %11 = vector.broadcast %cst_6 : f32 to vector<8x32xf32>
    %12 = arith.divf %11, %10 : vector<8x32xf32>
    %c0_7 = arith.constant 0 : index
    %c0_8 = arith.constant 0 : index
    %13 = vector.load %arg3[%c0_7, %c0_8] : memref<1x32xf32, #tpu.memory_space<vmem>>, vector<1x32xf32>
    %14 = vector.broadcast %13 : vector<1x32xf32> to vector<8x32xf32>
    %15 = arith.mulf %12, %14 : vector<8x32xf32>
    %cst_9 = arith.constant dense<0.000000e+00> : vector<8xf32>
    %16 = vector.multi_reduction <add>, %15, %cst_9 [1] : vector<8x32xf32> to vector<8xf32>
    %17 = vector.shape_cast %16 : vector<8xf32> to vector<8x1xf32>
    %c0_10 = arith.constant 0 : index
    %18 = memref.load %arg4[%c0_10] : memref<1xf32, #tpu.memory_space<smem>>
    %19 = vector.broadcast %18 : f32 to vector<8x1xf32>
    %20 = arith.addf %17, %19 : vector<8x1xf32>
    %cst_11 = arith.constant 0.000000e+00 : f32
    %21 = vector.broadcast %cst_11 : f32 to vector<8x1xf32>
    %22 = arith.subf %21, %20 : vector<8x1xf32>
    %23 = math.exp %22 : vector<8x1xf32>
    %cst_12 = arith.constant 1.000000e+00 : f32
    %24 = vector.broadcast %cst_12 : f32 to vector<8x1xf32>
    %25 = arith.addf %24, %23 : vector<8x1xf32>
    %cst_13 = arith.constant 1.000000e+00 : f32
    %26 = vector.broadcast %cst_13 : f32 to vector<8x1xf32>
    %27 = arith.divf %26, %25 : vector<8x1xf32>
    %c0_14 = arith.constant 0 : index
    %c0_15 = arith.constant 0 : index
    %28 = vector.load %arg5[%c0_14, %c0_15] : memref<8x1xf32, #tpu.memory_space<vmem>>, vector<8x1xf32>
    tpu.vector_store %arg5[%c0_14, %c0_15], %27 {strides = array<i32>} : memref<8x1xf32, #tpu.memory_space<vmem>>, vector<8x1xf32>,
    return
  }
  func.func @transform_0(%arg0: i32) -> (i32, i32) {
    %c0_i32 = arith.constant 0 : i32
    %c0_i32_0 = arith.constant 0 : i32
    return %arg0, %c0_i32 : i32, i32
  }
  func.func @transform_1(%arg0: i32) -> (i32, i32) {
    %c0_i32 = arith.constant 0 : i32
    %c0_i32_0 = arith.constant 0 : i32
    %c0_i32_1 = arith.constant 0 : i32
    return %c0_i32, %c0_i32_0 : i32, i32
  }
  func.func @transform_2(%arg0: i32) -> (i32, i32) {
    %c0_i32 = arith.constant 0 : i32
    %c0_i32_0 = arith.constant 0 : i32
    %c0_i32_1 = arith.constant 0 : i32
    return %c0_i32, %c0_i32_0 : i32, i32
  }
  func.func @transform_3(%arg0: i32) -> i32 {
    %c0_i32 = arith.constant 0 : i32
    %c0_i32_0 = arith.constant 0 : i32
    return %c0_i32 : i32
  }
  func.func @transform_4(%arg0: i32) -> (i32, i32) {
    %c0_i32 = arith.constant 0 : i32
    %c0_i32_0 = arith.constant 0 : i32
    return %arg0, %c0_i32 : i32, i32
  }
}

</mosaic_0001>

<bundles_post_ra>
// kernel: tpu_custom_call.1
= control target key start
LH: loop header
LB: loop body
LE: loop exit
PB: predicated region body
PF: predicated region fallthrough
CT: control target
= control target key end

     0   :  { %10 = vsyncpa [#allocation4], 0  ;;  %s246_s0 = inlined_call_operand.hbm [shape: f32[8,16], index: 0, kind: input, shape index: {}]   ;;  %s247_s1 = inlined_call_operand.hbm [shape: f32[17,32], index: 1, kind: input, shape index: {}]   ;;  %s248_s2 = inlined_call_operand.vmem [shape: f32[1,32], index: 2, kind: input, shape index: {}]   ;;  %s249_s3 = inlined_call_operand.<no memory space> [shape: f32[1], index: 3, kind: input, shape index: {}]   ;;  %s250_s4 = inlined_call_operand.vmem [shape: f32[8,1], index: 4, kind: output, shape index: {}]  }
   0x1   :  { %s17_s17 = sshll.u32 %s246_s0, 4  ;;  %s18_s17 = int_to_ptr.hbm [resolvable:$true] %s17_s17 }
   0x2   :  { %11 = vsyncpa [#allocation6], 0  ;;  %s202_s18 = smov [#allocation3]   ;;  %s27_s22 = sshll.u32 %s247_s1, 4  ;;  %s28_s22 = int_to_ptr.hbm [resolvable:$true] %s27_s22 }
   0x3   :  { %s19_s19 = sshll.u32 %s202_s18, 4  ;;  %s203_s23 = smov [#allocation5]   ;;  %s20_s19 = int_to_ptr.vmem [resolvable:$true] %s19_s19 }
   0x4   :  { %22 = dma.hbm_to_vmem [thread:$0]  %s18_s17, 128, %s20_s19, [#allocation4]  }
   0x5   :  { %s29_s24 = sshll.u32 %s203_s23, 4  ;;  %s204_s25 = smov 128   ;;  %s30_s24 = int_to_ptr.vmem [resolvable:$true] %s29_s24 }
   0x6   :  { %s205_s26 = smov 8  }
   0x7   :  { %35 = dma.hbm_to_vmem [thread:$0]  %s28_s22, 384, %s30_s24, [#allocation6], %s204_s25, %s204_s25, %s205_s26  }
   0x8   :  { %198 = dma.done.wait [#allocation4], 128  }
   0x9   :  { %199 = vsyncadd [#allocation4], 4294967168 }
   0xa   :  { %200 = dma.done.wait [#allocation6], 384  }
   0xb   :  { %201 = vsyncadd [#allocation6], 4294966912  ;;  %v50_v0 = vld [vmem:[#allocation5 + $0x8] sm:$0xff]  ;;  %v49_v1 = vld [vmem:[#allocation5] sm:$0xff]  ;;  %vm53_vm0 = vcmask 130048   ;;  %vm101_vm5 = vcmask 261120   ;;  %v106_v23 = vstv %s249_s3 }
   0xc   :  { %71 = vmatpush.msra.mxu0 %v50_v0  ;;  %v48_v2 = vld [vmem:[#allocation3] sm:$0xff]  ;;  %v140_v3 = vld [vmem:[#allocation5 + $0x10] ss:$0 sm:$0xff]  ;;  %vm127_vm9 = vcmask 7168  }
   0xd   :  { %v141_v17 = vld [vmem:[%s248_s2] ss:$0 sm:$0xff] }
   0xe   :  { %72 = vmatpush.msra.mxu0 %v49_v1 }
   0xf   :  { %135 = vmatmul.msk.f32.vlgmr.msra.gmra.mxu0 %vm53_vm0, %v48_v2 }
  0x8c   :  { %v74_v4 = vpop.f32.mrf.mxu0 }
  0x8d   :  { %v75_v5 = vadd.f32 %v140_v3, %v74_v4 }
  0x8f   :  { %v77_v6 = vsub.f32 0.0, %v75_v5 }
  0x91   :  { %v78_v7 = vmul.f32 1.442695, %v77_v6 }
  0x93   :  { %142 = vpow2.f32 %v78_v7 }
  0x99   :  { %v143_v8 = vpop.eup %142 }
  0x9a   :  { %v80_v9 = vadd.f32 1.0, %v143_v8 }
  0x9c   :  { %144 = vrcp.f32 %v80_v9  ;;  %v92_v13 = vand.u32 2147483648, %v80_v9  ;;  %v90_v15 = vand.u32 2147483647, %v80_v9  ;;  %vm86_vm2 = vweird.f32 %v80_v9 }
  0x9e   :  { %v93_v18 = vor.u32 1.1754944e-38, %v92_v13  ;;  %vm91_vm4 = vcmp.eq.f32.partialorder %v90_v15, 8.507059e+37 }
  0xa2   :  { %v145_v10 = vpop.eup %144 }
  0xa3   :  { %v82_v11 = vmul.f32 %v145_v10, %v80_v9  ;;  %vm87_vm1 = vweird.f32 %v145_v10 }
  0xa4   :  { %vm88_vm3 = vmor %vm86_vm2, %vm87_vm1 }
  0xa5   :  { %v83_v12 = vsub.f32 1.0, %v82_v11 }
  0xa7   :  { %v84_v14 = vmul.f32 %v145_v10, %v83_v12 }
  0xa9   :  { %v85_v16 = vadd.f32 %v145_v10, %v84_v14 }
  0xab   :  { %v89_v19 = vsel %vm88_vm3, %v145_v10, %v85_v16 }
  0xac   :  { %v94_v20 = vsel %vm91_vm4, %v93_v18, %v89_v19 }
  0xad   :  { %v100_v21 = vmul.f32 %v141_v17, %v94_v20 }
  0xaf   :  { %v102_v22 = vsel %vm101_vm5, %v100_v21, 0.0 }
  0xb0   :  { %103 = vadd.xlane.f32.xlu0 %v102_v22 }
 0x123   :  { %v104_v24 = vpop.xlane.xlu0 %103 }
 0x124   :  { %v107_v25 = vadd.f32 %v106_v23, %v104_v24 }
 0x126   :  { %v108_v26 = vsub.f32 0.0, %v107_v25 }
 0x128   :  { %v109_v27 = vmul.f32 1.442695, %v108_v26 }
 0x12a   :  { %146 = vpow2.f32 %v109_v27 }
 0x130   :  { %v147_v28 = vpop.eup %146 }
 0x131   :  { %v111_v29 = vadd.f32 1.0, %v147_v28 }
 0x133   :  { %148 = vrcp.f32 %v111_v29  ;;  %v123_v33 = vand.u32 2147483648, %v111_v29  ;;  %v121_v35 = vand.u32 2147483647, %v111_v29  ;;  %vm117_vm7 = vweird.f32 %v111_v29 }
 0x135   :  { %v124_v37 = vor.u32 1.1754944e-38, %v123_v33  ;;  %vm122_vm10 = vcmp.eq.f32.partialorder %v121_v35, 8.507059e+37 }
 0x139   :  { %v149_v30 = vpop.eup %148 }
 0x13a   :  { %v113_v31 = vmul.f32 %v149_v30, %v111_v29  ;;  %vm118_vm6 = vweird.f32 %v149_v30 }
 0x13b   :  { %vm119_vm8 = vmor %vm117_vm7, %vm118_vm6 }
 0x13c   :  { %v114_v32 = vsub.f32 1.0, %v113_v31 }
 0x13e   :  { %v115_v34 = vmul.f32 %v149_v30, %v114_v32 }
 0x140   :  { %v116_v36 = vadd.f32 %v149_v30, %v115_v34 }
 0x142   :  { %v120_v38 = vsel %vm119_vm8, %v149_v30, %v116_v36 }
 0x143   :  { %v125_v39 = vsel %vm122_vm10, %v124_v37, %v120_v38 }
 0x144   :  { %128 = vst.msk [vmem:[%s250_s4] sm:$0xff] %vm127_vm9, %v125_v39 }
 0x145   :  { %133 = vsyncpa [#allocation4], 1 }
 0x146   :  { %134 = vsyncpa [#allocation6], 1 }

</bundles_post_ra>
